<compile_context>
chip_gen: v5e
topology: v5e:2x2
jax: 0.10.0
libtpu: 0.0.40
codegen_flags: <defaults>
</compile_context>

<pallas_src>
import functools

import jax
import jax.numpy as jnp
from jax import lax
from jax.experimental import pallas as pl
from jax.experimental.pallas import tpu as pltpu


def _attention_kernel(q_ref, k_ref, v_ref, o_ref,
                      q_sc, m_sc, l_sc, acc_sc, *, mxu_dtype):
    # q_ref : (TQ, Lp) query-row tile (channel 0), constant across the KV axis
    # k_ref : (TK, Lp) K-row tile     (channel 1)
    # v_ref : (TK, Lp) V-row tile     (channel 2)
    # o_ref : (TQ, Lp) output tile (resident accumulator across the KV axis)
    kv = pl.program_id(1)

    @pl.when(kv == 0)
    def _init():
        # Hoist the loop-invariant 0.5 scale + MXU-dtype cast of the q tile:
        # done once per query tile instead of once per KV step.
        q_sc[...] = (q_ref[...] * 0.5).astype(mxu_dtype)
        m_sc[...] = jnp.full_like(m_sc, -jnp.inf)
        l_sc[...] = jnp.zeros_like(l_sc)
        acc_sc[...] = jnp.zeros_like(acc_sc)

    # s = (0.5*q) @ k^T : contract the last axes directly (no materialized
    # transpose of k before the MXU push).
    k = k_ref[...].astype(mxu_dtype)
    s = lax.dot_general(q_sc[...], k,
                        dimension_numbers=(((1,), (1,)), ((), ())),
                        preferred_element_type=jnp.float32)      # (TQ, TK)

    # Online (running max / running sum) softmax accumulation over KV tiles.
    m_prev = m_sc[...]
    m_new = jnp.maximum(m_prev, jnp.max(s, axis=-1, keepdims=True))
    alpha = jnp.exp(m_prev - m_new)
    p = jnp.exp(s - m_new)
    l_sc[...] = alpha * l_sc[...] + jnp.sum(p, axis=-1, keepdims=True)
    acc_sc[...] = alpha * acc_sc[...] + jnp.dot(
        p.astype(mxu_dtype), v_ref[...].astype(mxu_dtype),
        preferred_element_type=jnp.float32)
    m_sc[...] = m_new

    # TODO(synk): nn.Dropout(0.2) is identity in eval mode; training-mode
    # dropout would need pltpu.prng_seed/prng_random_bits masking + 1/(1-p).

    @pl.when(kv == pl.num_programs(1) - 1)
    def _finalize():
        # Normalize with the approximate (EUP) reciprocal instead of a VALU
        # divide.
        o_ref[...] = (acc_sc[...] *
                      pl.reciprocal(l_sc[...], approx=True)).astype(o_ref.dtype)


def attention_forward(x, *, tq=None, tk=None, mxu_dtype=jnp.bfloat16):
    """x: (N, C, H, W) float32, C >= 3. Returns (N, H*W) float32.

    mxu_dtype=jnp.bfloat16 (default) uses bf16 MXU inputs with f32
    accumulation (the fast path on v6e/v7x); pass jnp.float32 for exact
    parity with the PyTorch forward.
    """
    N, C, H, W = x.shape
    assert C >= 3, "Attention needs at least 3 channels (q, k, v)"
    L = H * W

    # Channel-major (3, N, L) layout: the q/k/v select becomes a cheap
    # leading-dim (squeezed) BlockSpec index, so the DMA engine gathers
    # exactly the q/k/v rows once each -- no C->8 sublane padding, no
    # in-kernel cross-sublane relayout.
    qkv = jnp.transpose(x.reshape(N, C, L)[:, :3, :], (1, 0, 2))   # (3, N, L)

    # Lane-dense output: pad L up to a multiple of 128.  Zero-padded q/k
    # columns do not change q@k^T; zero-padded v columns produce zero output
    # columns that are sliced off below.
    Lp = ((L + 127) // 128) * 128
    if Lp != L:
        qkv = jnp.pad(qkv, ((0, 0), (0, 0), (0, Lp - L)))

    # Query-row tile: 256 feeds the 256-wide MXU on v6e/v7x (use tq=128 on
    # v5e); falls back to N for small problems.
    if tq is None:
        tq = 256 if N % 256 == 0 else (128 if N % 128 == 0 else N)
    # KV-row tile (reduction axis): bounds VMEM residency independent of N so
    # the kernel fits v7x's 64 MiB VMEM and needs no vmem_limit override on
    # v5e's 16 MiB scoped default.
    if tk is None:
        tk = 512 if N % 512 == 0 else (128 if N % 128 == 0 else N)
    assert N % tq == 0 and N % tk == 0

    grid = (N // tq, N // tk)   # reduction (KV) axis last, marked "arbitrary"

    out = pl.pallas_call(
        functools.partial(_attention_kernel, mxu_dtype=mxu_dtype),
        out_shape=jax.ShapeDtypeStruct((N, Lp), jnp.float32),
        grid=grid,
        in_specs=[
            # q: channel 0, query-row tile i (index constant over the KV axis,
            # so it is DMA'd once per query tile).
            pl.BlockSpec((None, tq, Lp), lambda i, j: (0, i, 0)),
            # k: channel 1, KV-row tile j.
            pl.BlockSpec((None, tk, Lp), lambda i, j: (1, j, 0)),
            # v: channel 2, KV-row tile j.
            pl.BlockSpec((None, tk, Lp), lambda i, j: (2, j, 0)),
        ],
        out_specs=pl.BlockSpec((tq, Lp), lambda i, j: (i, 0)),
        scratch_shapes=[
            pltpu.VMEM((tq, Lp), mxu_dtype),     # scaled + cast q tile
            pltpu.VMEM((tq, 1), jnp.float32),    # running max m
            pltpu.VMEM((tq, 1), jnp.float32),    # running sum l
            pltpu.VMEM((tq, Lp), jnp.float32),   # f32 output accumulator
        ],
        compiler_params=pltpu.CompilerParams(
            dimension_semantics=("parallel", "arbitrary"),
        ),
    )(qkv, qkv, qkv)

    return out[:, :L] if Lp != L else out


def attention_ref(x, mxu_dtype=jnp.float32):
    """Pure-JAX reference mirroring the PyTorch forward (eval mode).

    mxu_dtype=jnp.float32 reproduces the exact PyTorch computation (the 0.5
    fold into q is exact); jnp.bfloat16 mirrors the kernel's mixed-precision
    MXU numerics.
    """
    N, C, H, W = x.shape
    out = x.reshape(N, C, H * W).transpose(1, 0, 2)   # (C, N, L)
    q, k, v = out[0], out[1], out[2]
    q = (q * 0.5).astype(mxu_dtype)
    k = k.astype(mxu_dtype)
    dp = jnp.dot(q, k.T, preferred_element_type=jnp.float32)
    attn = jax.nn.softmax(dp, axis=-1)
    # nn.Dropout(0.2) is identity in eval mode.
    return jnp.dot(attn.astype(mxu_dtype), v.astype(mxu_dtype),
                   preferred_element_type=jnp.float32)


if __name__ == "__main__":
    key = jax.random.PRNGKey(0)

    # Small shapes consistent with the forward: N=8, C=4, H=W=16 -> L=256.
    x = jax.random.normal(key, (8, 4, 16, 16), dtype=jnp.float32)

    # Exact-parity path (f32 MXU inputs): matches PyTorch up to the
    # approximate (EUP) reciprocal in the softmax normalization.
    out_f32 = attention_forward(x, mxu_dtype=jnp.float32)
    jax.block_until_ready(out_f32)
    assert out_f32.shape == (8, 256)
    assert jnp.allclose(out_f32, attention_ref(x), atol=5e-3, rtol=5e-3), \
        "f32 path mismatch vs reference"

    # Fast path (bf16 MXU inputs, f32 accumulation -- the v6e/v7x default):
    # compared against a reference with matching mixed-precision numerics.
    out_bf16 = attention_forward(x)
    jax.block_until_ready(out_bf16)
    assert jnp.allclose(out_bf16, attention_ref(x, jnp.bfloat16),
                        atol=1e-2, rtol=1e-2), "bf16 path mismatch vs reference"

    # Multi-tile case: N=16 with tq=tk=8 -> grid (2, 2), exercising the
    # online-softmax KV accumulation and the parallel query axis.
    x2 = jax.random.normal(jax.random.PRNGKey(0), (16, 4, 8, 16),
                           dtype=jnp.float32)
    out2 = attention_forward(x2, tq=8, tk=8, mxu_dtype=jnp.float32)
    jax.block_until_ready(out2)
    assert out2.shape == (16, 128)
    assert jnp.allclose(out2, attention_ref(x2), atol=5e-3, rtol=5e-3), \
        "multi-tile path mismatch vs reference"

    print("KERNEL_OK")
</pallas_src>

<mosaic_0001>
module attributes {stable_mosaic.version = 11 : i64} {
  func.func @_attention_kernel(%arg0: i32, %arg1: i32, %arg2: memref<1x8x256xf32, #tpu.memory_space<vmem>>, %arg3: memref<1x8x256xf32, #tpu.memory_space<vmem>>, %arg4: memref<1x8x256xf32, #tpu.memory_space<vmem>>, %arg5: memref<8x256xf32, #tpu.memory_space<vmem>>, %arg6: memref<8x256xf32, #tpu.memory_space<vmem>>, %arg7: memref<8x1xf32, #tpu.memory_space<vmem>>, %arg8: memref<8x1xf32, #tpu.memory_space<vmem>>, %arg9: memref<8x256xf32, #tpu.memory_space<vmem>>) attributes {dimension_semantics = [#tpu.dimension_semantics<parallel>, #tpu.dimension_semantics<arbitrary>], iteration_bounds = array<i64: 1, 1>, scalar_prefetch = 0 : i64, scratch_operands = 4 : i64, tpu.core_type = #tpu.core_type<tc>, window_params = [{transform_indices = @transform_0, window_bounds = array<i64: 1, 8, 256>}, {transform_indices = @transform_1, window_bounds = array<i64: 1, 8, 256>}, {transform_indices = @transform_2, window_bounds = array<i64: 1, 8, 256>}, {transform_indices = @transform_3, window_bounds = array<i64: 8, 256>}]} {
    %c0_i32 = arith.constant 0 : i32
    %0 = arith.cmpi eq, %arg1, %c0_i32 : i32
    %1 = arith.extui %0 : i1 to i32
    %c0_i32_0 = arith.constant 0 : i32
    %2 = arith.cmpi ne, %1, %c0_i32_0 : i32
    scf.if %2 {
      %c0_25 = arith.constant 0 : index
      %c0_26 = arith.constant 0 : index
      %c0_27 = arith.constant 0 : index
      %34 = vector.load %arg2[%c0_25, %c0_26, %c0_27] : memref<1x8x256xf32, #tpu.memory_space<vmem>>, vector<1x8x256xf32>
      %35 = vector.shape_cast %34 : vector<1x8x256xf32> to vector<8x256xf32>
      %cst_28 = arith.constant 5.000000e-01 : f32
      %36 = vector.broadcast %cst_28 : f32 to vector<8x256xf32>
      %37 = arith.mulf %35, %36 : vector<8x256xf32>
      %c0_29 = arith.constant 0 : index
      %c0_30 = arith.constant 0 : index
      %38 = vector.load %arg6[%c0_29, %c0_30] : memref<8x256xf32, #tpu.memory_space<vmem>>, vector<8x256xf32>
      tpu.vector_store %arg6[%c0_29, %c0_30], %37 {strides = array<i32>} : memref<8x256xf32, #tpu.memory_space<vmem>>, vector<8x256xf32>,
      %cst_31 = arith.constant 0xFF800000 : f32
      %39 = vector.broadcast %cst_31 : f32 to vector<8x1xf32>
      %c0_32 = arith.constant 0 : index
      %c0_33 = arith.constant 0 : index
      %40 = vector.load %arg7[%c0_32, %c0_33] : memref<8x1xf32, #tpu.memory_space<vmem>>, vector<8x1xf32>
      tpu.vector_store %arg7[%c0_32, %c0_33], %39 {strides = array<i32>} : memref<8x1xf32, #tpu.memory_space<vmem>>, vector<8x1xf32>,
      %cst_34 = arith.constant 0.000000e+00 : f32
      %41 = vector.broadcast %cst_34 : f32 to vector<8x1xf32>
      %c0_35 = arith.constant 0 : index
      %c0_36 = arith.constant 0 : index
      %42 = vector.load %arg8[%c0_35, %c0_36] : memref<8x1xf32, #tpu.memory_space<vmem>>, vector<8x1xf32>
      tpu.vector_store %arg8[%c0_35, %c0_36], %41 {strides = array<i32>} : memref<8x1xf32, #tpu.memory_space<vmem>>, vector<8x1xf32>,
      %cst_37 = arith.constant 0.000000e+00 : f32
      %43 = vector.broadcast %cst_37 : f32 to vector<8x256xf32>
      %c0_38 = arith.constant 0 : index
      %c0_39 = arith.constant 0 : index
      %44 = vector.load %arg9[%c0_38, %c0_39] : memref<8x256xf32, #tpu.memory_space<vmem>>, vector<8x256xf32>
      tpu.vector_store %arg9[%c0_38, %c0_39], %43 {strides = array<i32>} : memref<8x256xf32, #tpu.memory_space<vmem>>, vector<8x256xf32>,
    } else {
    }
    %c0 = arith.constant 0 : index
    %c0_1 = arith.constant 0 : index
    %c0_2 = arith.constant 0 : index
    %3 = vector.load %arg3[%c0, %c0_1, %c0_2] : memref<1x8x256xf32, #tpu.memory_space<vmem>>, vector<1x8x256xf32>
    %4 = vector.shape_cast %3 : vector<1x8x256xf32> to vector<8x256xf32>
    %c0_3 = arith.constant 0 : index
    %c0_4 = arith.constant 0 : index
    %5 = vector.load %arg6[%c0_3, %c0_4] : memref<8x256xf32, #tpu.memory_space<vmem>>, vector<8x256xf32>
    %cst = arith.constant dense<0.000000e+00> : vector<8x8xf32>
    %6 = tpu.matmul %5, %4, %cst {dimension_numbers = #tpu.dot_dimension_numbers<[1], [1], [0], [0], [0, 0, 1, 0], [], []>} : vector<8x256xf32>, vector<8x256xf32>, vector<8x8xf32> -> vector<8x8xf32>
    %c0_5 = arith.constant 0 : index
    %c0_6 = arith.constant 0 : index
    %7 = vector.load %arg7[%c0_5, %c0_6] : memref<8x1xf32, #tpu.memory_space<vmem>>, vector<8x1xf32>
    %cst_7 = arith.constant dense<0xFF800000> : vector<8xf32>
    %8 = vector.multi_reduction <maximumf>, %6, %cst_7 [1] : vector<8x8xf32> to vector<8xf32>
    %9 = vector.shape_cast %8 : vector<8xf32> to vector<8x1xf32>
    %10 = arith.maximumf %7, %9 : vector<8x1xf32>
    %11 = arith.subf %7, %10 : vector<8x1xf32>
    %12 = math.exp %11 : vector<8x1xf32>
    %13 = vector.broadcast %10 : vector<8x1xf32> to vector<8x8xf32>
    %14 = arith.subf %6, %13 : vector<8x8xf32>
    %15 = math.exp %14 : vector<8x8xf32>
    %c0_8 = arith.constant 0 : index
    %c0_9 = arith.constant 0 : index
    %16 = vector.load %arg8[%c0_8, %c0_9] : memref<8x1xf32, #tpu.memory_space<vmem>>, vector<8x1xf32>
    %17 = arith.mulf %12, %16 : vector<8x1xf32>
    %cst_10 = arith.constant dense<0.000000e+00> : vector<8xf32>
    %18 = vector.multi_reduction <add>, %15, %cst_10 [1] : vector<8x8xf32> to vector<8xf32>
    %19 = vector.shape_cast %18 : vector<8xf32> to vector<8x1xf32>
    %20 = arith.addf %17, %19 : vector<8x1xf32>
    %c0_11 = arith.constant 0 : index
    %c0_12 = arith.constant 0 : index
    %21 = vector.load %arg8[%c0_11, %c0_12] : memref<8x1xf32, #tpu.memory_space<vmem>>, vector<8x1xf32>
    tpu.vector_store %arg8[%c0_11, %c0_12], %20 {strides = array<i32>} : memref<8x1xf32, #tpu.memory_space<vmem>>, vector<8x1xf32>,
    %c0_13 = arith.constant 0 : index
    %c0_14 = arith.constant 0 : index
    %22 = vector.load %arg9[%c0_13, %c0_14] : memref<8x256xf32, #tpu.memory_space<vmem>>, vector<8x256xf32>
    %23 = vector.broadcast %12 : vector<8x1xf32> to vector<8x256xf32>
    %24 = arith.mulf %23, %22 : vector<8x256xf32>
    %c0_15 = arith.constant 0 : index
    %c0_16 = arith.constant 0 : index
    %c0_17 = arith.constant 0 : index
    %25 = vector.load %arg4[%c0_15, %c0_16, %c0_17] : memref<1x8x256xf32, #tpu.memory_space<vmem>>, vector<1x8x256xf32>
    %26 = vector.shape_cast %25 : vector<1x8x256xf32> to vector<8x256xf32>
    %cst_18 = arith.constant dense<0.000000e+00> : vector<8x256xf32>
    %27 = tpu.matmul %15, %26, %cst_18 {dimension_numbers = #tpu.dot_dimension_numbers<[1], [0], [0], [1], [0, 0, 1, 1], [], []>} : vector<8x8xf32>, vector<8x256xf32>, vector<8x256xf32> -> vector<8x256xf32>
    %28 = arith.addf %24, %27 : vector<8x256xf32>
    %c0_19 = arith.constant 0 : index
    %c0_20 = arith.constant 0 : index
    %29 = vector.load %arg9[%c0_19, %c0_20] : memref<8x256xf32, #tpu.memory_space<vmem>>, vector<8x256xf32>
    tpu.vector_store %arg9[%c0_19, %c0_20], %28 {strides = array<i32>} : memref<8x256xf32, #tpu.memory_space<vmem>>, vector<8x256xf32>,
    %c0_21 = arith.constant 0 : index
    %c0_22 = arith.constant 0 : index
    %30 = vector.load %arg7[%c0_21, %c0_22] : memref<8x1xf32, #tpu.memory_space<vmem>>, vector<8x1xf32>
    tpu.vector_store %arg7[%c0_21, %c0_22], %10 {strides = array<i32>} : memref<8x1xf32, #tpu.memory_space<vmem>>, vector<8x1xf32>,
    %c0_i32_23 = arith.constant 0 : i32
    %31 = arith.cmpi eq, %arg1, %c0_i32_23 : i32
    %32 = arith.extui %31 : i1 to i32
    %c0_i32_24 = arith.constant 0 : i32
    %33 = arith.cmpi ne, %32, %c0_i32_24 : i32
    scf.if %33 {
      %c0_25 = arith.constant 0 : index
      %c0_26 = arith.constant 0 : index
      %34 = vector.load %arg9[%c0_25, %c0_26] : memref<8x256xf32, #tpu.memory_space<vmem>>, vector<8x256xf32>
      %c0_27 = arith.constant 0 : index
      %c0_28 = arith.constant 0 : index
      %35 = vector.load %arg8[%c0_27, %c0_28] : memref<8x1xf32, #tpu.memory_space<vmem>>, vector<8x1xf32>
      %36 = tpu.reciprocal %35 {approx = true} : vector<8x1xf32> -> vector<8x1xf32>
      %37 = vector.broadcast %36 : vector<8x1xf32> to vector<8x256xf32>
      %38 = arith.mulf %34, %37 : vector<8x256xf32>
      %c0_29 = arith.constant 0 : index
      %c0_30 = arith.constant 0 : index
      %39 = vector.load %arg5[%c0_29, %c0_30] : memref<8x256xf32, #tpu.memory_space<vmem>>, vector<8x256xf32>
      tpu.vector_store %arg5[%c0_29, %c0_30], %38 {strides = array<i32>} : memref<8x256xf32, #tpu.memory_space<vmem>>, vector<8x256xf32>,
    } else {
    }
    return
  }
  func.func @transform_0(%arg0: i32, %arg1: i32) -> (i32, i32, i32) {
    %c0_i32 = arith.constant 0 : i32
    %c0_i32_0 = arith.constant 0 : i32
    %c0_i32_1 = arith.constant 0 : i32
    return %c0_i32, %arg0, %c0_i32_0 : i32, i32, i32
  }
  func.func @transform_1(%arg0: i32, %arg1: i32) -> (i32, i32, i32) {
    %c1_i32 = arith.constant 1 : i32
    %c0_i32 = arith.constant 0 : i32
    %c0_i32_0 = arith.constant 0 : i32
    return %c1_i32, %arg1, %c0_i32 : i32, i32, i32
  }
  func.func @transform_2(%arg0: i32, %arg1: i32) -> (i32, i32, i32) {
    %c2_i32 = arith.constant 2 : i32
    %c0_i32 = arith.constant 0 : i32
    %c0_i32_0 = arith.constant 0 : i32
    return %c2_i32, %arg1, %c0_i32 : i32, i32, i32
  }
  func.func @transform_3(%arg0: i32, %arg1: i32) -> (i32, i32) {
    %c0_i32 = arith.constant 0 : i32
    %c0_i32_0 = arith.constant 0 : i32
    return %arg0, %c0_i32 : i32, i32
  }
}

</mosaic_0001>

<bundles_post_ra>
// kernel: tpu_custom_call.1
= control target key start
LH: loop header
LB: loop body
LE: loop exit
PB: predicated region body
PF: predicated region fallthrough
CT: control target
= control target key end

     0   :  { %8 = vsyncpa [#allocation7], 0  ;;  %s402_s0 = inlined_call_operand.hbm [shape: f32[3,8,256], index: 0, kind: input, shape index: {}]   ;;  %s403_s1 = inlined_call_operand.hbm [shape: f32[3,8,256], index: 1, kind: input, shape index: {}]   ;;  %s404_s2 = inlined_call_operand.hbm [shape: f32[3,8,256], index: 2, kind: input, shape index: {}]   ;;  %s405_s3 = inlined_call_operand.hbm [shape: f32[8,256], index: 3, kind: output, shape index: {}]  }
   0x1   :  { %9 = vsyncpa [#allocation10], 0  ;;  %s26_s14 = scalar_lea.hbm %s403_s1, 16 }
   0x2   :  { %10 = vsyncpa [#allocation8], 0  ;;  %s28_s15 = sshll.u32 %s26_s14, 4  ;;  %s355_s16 = smov [#allocation9]   ;;  %s29_s15 = int_to_ptr.hbm [resolvable:$true] %s28_s15 }
   0x3   :  { %s30_s17 = sshll.u32 %s355_s16, 4  ;;  %s16_s20 = sshll.u32 %s402_s0, 4  ;;  %s31_s17 = int_to_ptr.vmem [resolvable:$true] %s30_s17  ;;  %s17_s20 = int_to_ptr.hbm [resolvable:$true] %s16_s20 }
   0x4   :  { %33 = dma.hbm_to_vmem [thread:$0]  %s29_s15, 256, %s31_s17, [#allocation10]  }
   0x5   :  { %s356_s21 = smov [#allocation6]   ;;  %s38_s25 = scalar_lea.hbm %s404_s2, 32 }
   0x6   :  { %s18_s22 = sshll.u32 %s356_s21, 4  ;;  %s40_s1 = sshll.u32 %s38_s25, 4  ;;  %s19_s22 = int_to_ptr.vmem [resolvable:$true] %s18_s22  ;;  %s41_s1 = int_to_ptr.hbm [resolvable:$true] %s40_s1 }
   0x7   :  { %21 = dma.hbm_to_vmem [thread:$0]  %s17_s20, 256, %s19_s22, [#allocation7]  }
   0x8   :  { %s357_s26 = smov [#allocation11]  }
   0x9   :  { %s42_s27 = sshll.u32 %s357_s26, 4  ;;  %s43_s27 = int_to_ptr.vmem [resolvable:$true] %s42_s27 }
   0xa   :  { %45 = dma.hbm_to_vmem [thread:$0]  %s41_s1, 256, %s43_s27, [#allocation10]  }
   0xb   :  { %349 = dma.done.wait [#allocation7], 256  }
   0xc   :  { %350 = vsyncadd [#allocation7], 4294967040 }
   0xd   :  { %351 = dma.done.wait [#allocation10], 512  }
   0xe   :  { %352 = vsyncadd [#allocation10], 4294966784  ;;  %v73_v0 = vld [vmem:[#allocation9] sm:$0xff]  ;;  %v74_v1 = vld [vmem:[#allocation9 + $0x8] sm:$0xff]  ;;  %vm68_vm0 = vcmask 7168   ;;  %v358_v6 = vmov -inf  }
   0xf   :  { %v62_v2 = vld [vmem:[#allocation6] sm:$0xff]  ;;  %92 = vmatpush.xpose.msra.mxu0 %v73_v0  ;;  %112 = vmatpush.xpose.msra.mxu1 %v74_v1  ;;  %v63_v4 = vld [vmem:[#allocation6 + $0x8] sm:$0xff]  ;;  %69 = vst.msk [vmem:[#allocation3] sm:$0xff] %vm68_vm0, %v358_v6  ;;  %vm118_vm1 = vcmask 64512   ;;  %v359_v11 = vmov 0   ;;  %v360_v12 = vmov 0.0  }
  0x10   :  { %v64_v3 = vmul.f32 0.5, %v62_v2  ;;  %v65_v5 = vmul.f32 0.5, %v63_v4  ;;  %244 = vset.pattern.permute.xlu0 %v359_v11  ;;  %245 = vset.pattern.permute.xlu1 %v359_v11  ;;  %70 = vst.msk [vmem:[#allocation4] sm:$0xff] %vm68_vm0, %v360_v12  ;;  %v151_v17 = vld [vmem:[#allocation11] sm:$0xff]  ;;  %v152_v18 = vld [vmem:[#allocation11 + $0x8] sm:$0xff]  ;;  %s361_s0 = smov [#allocation12]  }
  0x11   :  { %246 = vset.pattern.permute.xlu2 %v359_v11  ;;  %171 = vmatpush.msra.mxu2 %v151_v17  ;;  %s222_s2 = sshll.u32 %s361_s0, 4  ;;  %s224_s30 = sshll.u32 %s405_s3, 4  ;;  %s223_s2 = int_to_ptr.vmem [resolvable:$true] %s222_s2  ;;  %s225_s30 = int_to_ptr.hbm [resolvable:$true] %s224_s30 }
  0x12   :  { %93 = vmatmul.f32.vlgmr.msra.gmra.mxu0 %v64_v3  ;;  %113 = vmatmul.f32.vlgmr.msra.gmra.mxu1 %v65_v5 }
  0x13   :  { %191 = vmatpush.msra.mxu3 %v152_v18 }
  0x16   :  { %v117_v13 = vld [vmem:[#allocation3] sm:$0xff] }
  0x17   :  { %v134_v26 = vld [vmem:[#allocation4] sm:$0xff] }
  0x8f   :  { %v94_v7 = vpop.f32.mrf.mxu0  ;;  %v114_v8 = vpop.f32.mrf.mxu1 }
  0x90   :  { %v115_v9 = vadd.f32 %v114_v8, %v94_v7 }
  0x92   :  { %v119_v10 = vsel %vm118_vm1, %v115_v9, -inf }
  0x93   :  { %120 = vmax.xlane.f32.xlu0 %v119_v10 }
 0x106   :  { %v121_v14 = vpop.xlane.xlu0 %120 }
 0x107   :  { %v122_v15 = vmax.f32 %v117_v13, %v121_v14 }
 0x109   :  { %v123_v16 = vsub.f32 %v117_v13, %v122_v15  ;;  %200 = vst.msk [vmem:[#allocation3] sm:$0xff] %vm68_vm0, %v122_v15  ;;  %128 = vperm.xlu0 %244, %v122_v15  }
 0x10b   :  { %v124_v24 = vmul.f32 1.442695, %v123_v16 }
 0x17b   :  { %v129_v19 = vpop.permute.xlu0 %128 }
 0x17c   :  { %v131_v20 = vsub.f32 %v115_v9, %v129_v19 }
 0x17e   :  { %v132_v21 = vmul.f32 1.442695, %v131_v20 }
 0x180   :  { %247 = vpow2.f32 %v132_v21 }
 0x181   :  { %249 = vpow2.f32 %v124_v24 }
 0x186   :  { %v248_v22 = vpop.eup %247 }
 0x187   :  { %235 = vmatmul.msk.f32.vlgmr.msra.gmra.mxu2 %vm118_vm1, %v248_v22  ;;  %236 = vmatmul.msk.f32.vlgmr.msra.gmra.mxu3 %vm118_vm1, %v248_v22  ;;  %v136_v23 = vsel %vm118_vm1, %v248_v22, 0.0  ;;  %v250_v25 = vpop.eup %249 }
 0x188   :  { %137 = vadd.xlane.f32.xlu1 %v136_v23  ;;  %v135_v27 = vmul.f32 %v250_v25, %v134_v26 }
 0x1a1   :  { %146 = vperm.xlu1 %245, %v250_v25  }
 0x1fb   :  { %v138_v28 = vpop.xlane.xlu1 %137 }
 0x1fc   :  { %v139_v29 = vadd.f32 %v138_v28, %v135_v27 }
 0x1fe   :  { %141 = vst.msk [vmem:[#allocation4] sm:$0xff] %vm68_vm0, %v139_v29 }
 0x205   :  { %v206_v30 = vld [vmem:[#allocation4] sm:$0xff] }
 0x206   :  { %251 = vrcp.f32 %v206_v30 }
 0x20a   :  { %v173_v34 = vpop.f32.mrf.mxu2  ;;  %v193_v35 = vpop.f32.mrf.mxu3 }
 0x20c   :  { %v252_v31 = vpop.eup %251 }
 0x20d   :  { %210 = vperm.xlu2 %246, %v252_v31  }
 0x213   :  { %v147_v32 = vpop.permute.xlu1 %146 }
 0x214   :  { %v149_v33 = vmul.f32 0.0, %v147_v32 }
 0x216   :  { %v196_v36 = vadd.f32 %v173_v34, %v149_v33  ;;  %v197_v37 = vadd.f32 %v193_v35, %v149_v33 }
 0x267   :  { %v211_v38 = vpop.permute.xlu2 %210 }
 0x268   :  { %v213_v39 = vmul.f32 %v211_v38, %v196_v36  ;;  %v214_v40 = vmul.f32 %v211_v38, %v197_v37 }
 0x26a   :  { %215 = vst [vmem:[#allocation12] sm:$0xff] %v213_v39 }
 0x26b   :  { %216 = vst [vmem:[#allocation12 + $0x8] sm:$0xff] %v214_v40 }
 0x26c   :  { %227 = dma.vmem_to_hbm [thread:$0]  %s223_s2, 256, %s225_s30, [#allocation8]  }
 0x26d   :  { %353 = dma.done.wait [#allocation8], 256  }
 0x26e   :  { %354 = vsyncadd [#allocation8], 4294967040 }
 0x26f   :  { %232 = vsyncpa [#allocation7], 1 }
 0x270   :  { %233 = vsyncpa [#allocation10], 1 }
 0x271   :  { %234 = vsyncpa [#allocation8], 1 }

</bundles_post_ra>
